<compile_context>
chip_gen: v6e
topology: v6e:2x2x1
jax: 0.10.0
libtpu: 0.0.40
codegen_flags: <defaults>
</compile_context>

<pallas_src>
import numpy as np
import jax
import jax.numpy as jnp
from jax.experimental import pallas as pl
from jax.experimental.pallas import tpu as pltpu


# ----------------------------------------------------------------------------
# Positional encoding table (exact port of the torch helper, numpy/float32).
# ----------------------------------------------------------------------------
def positional_encoding(n_position, emb_dim):
    position_enc = np.array(
        [
            [pos / np.power(10000, 2 * (j // 2) / emb_dim) for j in range(emb_dim)]
            if pos != 0
            else np.zeros(emb_dim)
            for pos in range(n_position)
        ]
    )
    position_enc[1:, 0::2] = np.sin(position_enc[1:, 0::2])
    position_enc[1:, 1::2] = np.cos(position_enc[1:, 1::2])
    return position_enc.astype(np.float32)


# ----------------------------------------------------------------------------
# Fused kernel: encoder (1x1 conv) + PE add + attention decoder, per batch b.
#   enc_T   = W_enc^T @ x_b + b_enc + pe^T          (D, hw)   (no transposes)
#   scores  = Q @ enc_T                              (T, hw)
#   weights = softmax(scores, -1)                    (T, hw)
#   ctx     = weights (.) enc_T   (contract hw)      (T, D)
#   logits  = ctx @ W_out_pad + b_out_pad            (T, Vpad)  Vpad = 128-mult
# Batch reorder by descending y_len is done by the x BlockSpec index map using
# the scalar-prefetched sort index, so outputs are written in sorted order.
# ----------------------------------------------------------------------------
def _fused_enc_dec_kernel(idx_ref, x_ref, wet_ref, bec_ref, pet_ref,
                          q_ref, wo_ref, bo_ref, out_ref, wts_ref):
    del idx_ref  # only consumed by the BlockSpec index maps (batch reorder)

    x_b = x_ref[0]                                             # (C, hw) NCHW slice
    # encoder 1x1 conv computed transposed: enc_T[d, p] = sum_c W[c, d] * x[c, p]
    # (K = C is tiny; on v5e this still under-fills the MXU -- acceptable here,
    #  a real encoder has C >= 32.)
    enc_t = jnp.dot(wet_ref[...], x_b, preferred_element_type=jnp.float32)  # (D, hw)
    enc_t = enc_t + bec_ref[...] + pet_ref[...]

    # attention scores: (T, D) @ (D, hw) -> (T, hw), no transpose needed.
    scores = jnp.dot(q_ref[...], enc_t, preferred_element_type=jnp.float32)
    m = jnp.max(scores, axis=-1, keepdims=True)
    e = jnp.exp(scores - m)
    denom = jnp.sum(e, axis=-1, keepdims=True)
    wts = e * pl.reciprocal(denom, approx=True)                 # EUP, not VALU divide

    # context: contract over hw (rhs last-dim contraction, no transpose).
    ctx = jax.lax.dot_general(
        wts, enc_t,
        dimension_numbers=(((1,), (1,)), ((), ())),
        preferred_element_type=jnp.float32)                     # (T, D)

    logits = jnp.dot(ctx, wo_ref[...], preferred_element_type=jnp.float32) + bo_ref[...]

    out_ref[0] = logits.astype(out_ref.dtype)                   # (T, Vpad) lane-dense
    wts_ref[0] = wts.astype(wts_ref.dtype)                      # (T, hw)


def fused_encoder_decoder(x_nchw, params, pe_table, sort_idx):
    bs, c, h, w = x_nchw.shape
    hw = h * w
    d = params["w_enc"].shape[1]
    t = params["q_dec"].shape[0]
    v = params["w_out"].shape[1]
    vpad = ((v + 127) // 128) * 128                             # lane-dense logits

    # One-time tiny parameter re-layouts (constant-folded under jit).
    w_enc_t = jnp.transpose(params["w_enc"], (1, 0))            # (D, C)
    b_enc_c = params["b_enc"].reshape(d, 1)                     # (D, 1)
    pe_t = jnp.asarray(np.ascontiguousarray(pe_table[:hw].T))   # (D, hw)
    w_out_p = jnp.pad(params["w_out"], ((0, 0), (0, vpad - v))) # (D, Vpad)
    b_out_p = jnp.pad(params["b_out"], ((0, 0), (0, vpad - v))) # (1, Vpad)

    x3 = x_nchw.reshape(bs, c, hw)                              # free reshape (NCHW)

    grid_spec = pltpu.PrefetchScalarGridSpec(
        num_scalar_prefetch=1,
        grid=(bs,),
        in_specs=[
            pl.BlockSpec((1, c, hw), lambda b, idx: (idx[b], 0, 0)),  # batch reorder via DMA
            pl.BlockSpec((d, c), lambda b, idx: (0, 0)),
            pl.BlockSpec((d, 1), lambda b, idx: (0, 0)),
            pl.BlockSpec((d, hw), lambda b, idx: (0, 0)),
            pl.BlockSpec((t, d), lambda b, idx: (0, 0)),
            # TODO(synk): for production vocab (>=8K) add a vocab grid axis
            # ("arbitrary") tiling Vpad at 512-1024 so the double-buffered
            # w_out block fits v7x's 64 MiB VMEM.
            pl.BlockSpec((d, vpad), lambda b, idx: (0, 0)),
            pl.BlockSpec((1, vpad), lambda b, idx: (0, 0)),
        ],
        out_specs=(
            pl.BlockSpec((1, t, vpad), lambda b, idx: (b, 0, 0)),
            pl.BlockSpec((1, t, hw), lambda b, idx: (b, 0, 0)),
        ),
    )

    logits, weights = pl.pallas_call(
        _fused_enc_dec_kernel,
        out_shape=(
            jax.ShapeDtypeStruct((bs, t, vpad), jnp.float32),   # sorted batch order
            jax.ShapeDtypeStruct((bs, t, hw), jnp.float32),
        ),
        grid_spec=grid_spec,
        compiler_params=pltpu.CompilerParams(
            dimension_semantics=("parallel",),                  # 2 TCs on v7x
            vmem_limit_bytes=32 * 1024 * 1024,
        ),
    )(sort_idx, x3, w_enc_t, b_enc_c, pe_t, params["q_dec"], w_out_p, b_out_p)
    return logits, weights, vpad


# ----------------------------------------------------------------------------
# Masked cross-entropy (== pack_padded_sequence + CrossEntropyLoss(mean)).
# Row-tiled over N with grid accumulation into a resident (1,1) output block;
# padded vocab columns are masked to -inf so the padding does not shift lse.
# ----------------------------------------------------------------------------
def masked_cross_entropy(logits2d, labels2d, valid2d, v_real, inv_n, row_tile=8):
    n, vpad = logits2d.shape
    n_pad = ((n + row_tile - 1) // row_tile) * row_tile
    if n_pad != n:
        logits2d = jnp.pad(logits2d, ((0, n_pad - n), (0, 0)))
        labels2d = jnp.pad(labels2d, ((0, n_pad - n), (0, 0)))
        valid2d = jnp.pad(valid2d, ((0, n_pad - n), (0, 0)))

    def ce_kernel(logits_ref, labels_ref, valid_ref, loss_ref):
        i = pl.program_id(0)

        @pl.when(i == 0)
        def _():
            loss_ref[...] = jnp.zeros_like(loss_ref)

        logits = logits_ref[...]                                 # (TR, Vpad) f32
        labels = labels_ref[...]                                 # (TR, 1)  i32
        valid = valid_ref[...]                                   # (TR, 1)  f32
        col = jax.lax.broadcasted_iota(jnp.int32, logits.shape, 1)
        # mask the lane-padding vocab columns so logsumexp is over the real vocab
        logits = jnp.where(col < v_real, logits, jnp.float32(-1e30))
        onehot = (col == labels).astype(jnp.float32)
        tgt = jnp.sum(logits * onehot, axis=-1, keepdims=True)   # (TR, 1)
        m = jnp.max(logits, axis=-1, keepdims=True)
        lse = jnp.log(jnp.sum(jnp.exp(logits - m), axis=-1, keepdims=True)) + m
        loss_ref[...] += jnp.sum((lse - tgt) * valid) * jnp.float32(inv_n)

    out = pl.pallas_call(
        ce_kernel,
        out_shape=jax.ShapeDtypeStruct((1, 1), jnp.float32),
        grid=(n_pad // row_tile,),
        in_specs=[
            pl.BlockSpec((row_tile, vpad), lambda i: (i, 0)),
            pl.BlockSpec((row_tile, 1), lambda i: (i, 0)),
            pl.BlockSpec((row_tile, 1), lambda i: (i, 0)),
        ],
        out_specs=pl.BlockSpec((1, 1), lambda i: (0, 0)),
        compiler_params=pltpu.CompilerParams(dimension_semantics=("arbitrary",)),
    )(logits2d, labels2d, valid2d)
    return out[0, 0]


# ----------------------------------------------------------------------------
# pack_padded_sequence index construction (time-major over sorted-descending
# lengths).  Data-dependent output shape -> needs concrete (host) y_len.
# ----------------------------------------------------------------------------
def build_pack_indices(lengths_sorted_desc):
    t_max = int(lengths_sorted_desc[0])
    tt, bb = [], []
    for t in range(t_max):
        for b in range(len(lengths_sorted_desc)):
            if t < int(lengths_sorted_desc[b]):
                tt.append(t)
                bb.append(b)
    return np.asarray(tt, np.int32), np.asarray(bb, np.int32)


# ----------------------------------------------------------------------------
# Forward pass of EncoderDecoderBase.
# ----------------------------------------------------------------------------
def encoder_decoder_base_forward(x_nchw, y, y_len_np, params, pe_table):
    bs, c, h, w = x_nchw.shape
    t = params["q_dec"].shape[0]
    v = params["w_out"].shape[1]

    # y_len.sort(dim=0, descending=True).  The x reorder is folded into the
    # fused kernel's input index map (scalar prefetch) -- no HBM gather of enc.
    idx = np.argsort(-y_len_np, kind="stable").astype(np.int32)
    y_len_sorted = y_len_np[idx]
    sort_idx = jnp.asarray(idx)

    # encoder + PE + decoder, fused; outputs already in sorted batch order.
    logits, weights, vpad = fused_encoder_decoder(x_nchw, params, pe_table, sort_idx)
    # logits : (bs, T, Vpad), weights : (bs, T, hw)

    # --- loss: masked CE over the padded (bs*T, Vpad) slab.  Identical value
    #     to pack_padded_sequence + CrossEntropyLoss(mean).
    y_sorted_bt = jnp.transpose(y[:, sort_idx], (1, 0))          # (bs, T) tiny gather
    labels2d = y_sorted_bt.reshape(bs * t, 1).astype(jnp.int32)
    valid_np = (np.arange(t)[None, :] < y_len_sorted[:, None]).astype(np.float32)
    valid2d = jnp.asarray(valid_np.reshape(bs * t, 1))
    inv_n = 1.0 / float(y_len_np.sum())
    loss = masked_cross_entropy(logits.reshape(bs * t, vpad), labels2d, valid2d, v, inv_n)

    # --- packed outputs (data-dependent shape): single gather on the final,
    #     small logits; indices built host-side from concrete y_len.
    tt, bb = build_pack_indices(y_len_sorted)
    outputs_packed = logits[jnp.asarray(bb), jnp.asarray(tt)][:, :v]   # (N, V)

    # --- sequence_to_feature_map(weights, bs, h, w)  (tiny 3 KiB transpose)
    weights_map = jnp.transpose(weights, (1, 0, 2)).reshape(t, bs, h, w)

    return {"outputs": outputs_packed, "weights": weights_map, "loss": loss}


# ----------------------------------------------------------------------------
# Demo
# ----------------------------------------------------------------------------
if __name__ == "__main__":
    bs, c_in, h, w = 2, 4, 8, 8
    d_model = 32      # opts.encoder.output_dim
    vocab = 16
    t_dec = 8

    key = jax.random.PRNGKey(0)
    k_x, k_w, k_b, k_q, k_wo, k_bo, k_y = jax.random.split(key, 7)

    x = jax.random.normal(k_x, (bs, c_in, h, w), jnp.float32)
    y = jax.random.randint(k_y, (t_dec, bs), 0, vocab, jnp.int32)
    y_len = np.array([5, 8], np.int64)   # per-batch target lengths (host data)

    params = {
        "w_enc": jax.random.normal(k_w, (c_in, d_model), jnp.float32) * 0.1,
        "b_enc": jax.random.normal(k_b, (1, d_model), jnp.float32) * 0.1,
        "q_dec": jax.random.normal(k_q, (t_dec, d_model), jnp.float32) * 0.1,
        "w_out": jax.random.normal(k_wo, (d_model, vocab), jnp.float32) * 0.1,
        "b_out": jax.random.normal(k_bo, (1, vocab), jnp.float32) * 0.1,
    }

    pe_table = positional_encoding(10000, d_model)

    result = encoder_decoder_base_forward(x, y, y_len, params, pe_table)
    jax.block_until_ready(result["loss"])
    jax.block_until_ready(result["outputs"])
    jax.block_until_ready(result["weights"])

    assert result["outputs"].shape == (int(y_len.sum()), vocab)
    assert result["weights"].shape == (t_dec, bs, h, w)
    assert result["loss"].shape == ()
    assert bool(np.isfinite(np.asarray(result["loss"])))
    print("KERNEL_OK")
</pallas_src>

<mosaic_0001>
module attributes {stable_mosaic.version = 11 : i64} {
  func.func @_fused_enc_dec_kernel(%arg0: i32, %arg1: memref<2xi32, #tpu.memory_space<smem>>, %arg2: memref<1x4x64xf32, #tpu.memory_space<vmem>>, %arg3: memref<32x4xf32, #tpu.memory_space<vmem>>, %arg4: memref<32x1xf32, #tpu.memory_space<vmem>>, %arg5: memref<32x64xf32, #tpu.memory_space<vmem>>, %arg6: memref<8x32xf32, #tpu.memory_space<vmem>>, %arg7: memref<32x128xf32, #tpu.memory_space<vmem>>, %arg8: memref<1x128xf32, #tpu.memory_space<vmem>>, %arg9: memref<1x8x128xf32, #tpu.memory_space<vmem>>, %arg10: memref<1x8x64xf32, #tpu.memory_space<vmem>>) attributes {dimension_semantics = [#tpu.dimension_semantics<parallel>], iteration_bounds = array<i64: 2>, scalar_prefetch = 1 : i64, scratch_operands = 0 : i64, tpu.core_type = #tpu.core_type<tc>, window_params = [{transform_indices = @transform_0, window_bounds = array<i64: 1, 4, 64>}, {pipeline_mode = #tpu.pipeline_mode<synchronous>, transform_indices = @transform_1, window_bounds = array<i64: 32, 4>}, {pipeline_mode = #tpu.pipeline_mode<synchronous>, transform_indices = @transform_2, window_bounds = array<i64: 32, 1>}, {pipeline_mode = #tpu.pipeline_mode<synchronous>, transform_indices = @transform_3, window_bounds = array<i64: 32, 64>}, {pipeline_mode = #tpu.pipeline_mode<synchronous>, transform_indices = @transform_4, window_bounds = array<i64: 8, 32>}, {pipeline_mode = #tpu.pipeline_mode<synchronous>, transform_indices = @transform_5, window_bounds = array<i64: 32, 128>}, {pipeline_mode = #tpu.pipeline_mode<synchronous>, transform_indices = @transform_6, window_bounds = array<i64: 1, 128>}, {transform_indices = @transform_7, window_bounds = array<i64: 1, 8, 128>}, {transform_indices = @transform_8, window_bounds = array<i64: 1, 8, 64>}]} {
    %c0 = arith.constant 0 : index
    %c0_0 = arith.constant 0 : index
    %c0_1 = arith.constant 0 : index
    %0 = vector.load %arg2[%c0, %c0_0, %c0_1] : memref<1x4x64xf32, #tpu.memory_space<vmem>>, vector<1x4x64xf32>
    %1 = vector.shape_cast %0 : vector<1x4x64xf32> to vector<4x64xf32>
    %c0_2 = arith.constant 0 : index
    %c0_3 = arith.constant 0 : index
    %2 = vector.load %arg3[%c0_2, %c0_3] : memref<32x4xf32, #tpu.memory_space<vmem>>, vector<32x4xf32>
    %cst = arith.constant dense<0.000000e+00> : vector<32x64xf32>
    %3 = tpu.matmul %2, %1, %cst {dimension_numbers = #tpu.dot_dimension_numbers<[1], [0], [0], [1], [0, 0, 1, 1], [], []>} : vector<32x4xf32>, vector<4x64xf32>, vector<32x64xf32> -> vector<32x64xf32>
    %c0_4 = arith.constant 0 : index
    %c0_5 = arith.constant 0 : index
    %4 = vector.load %arg4[%c0_4, %c0_5] : memref<32x1xf32, #tpu.memory_space<vmem>>, vector<32x1xf32>
    %5 = vector.broadcast %4 : vector<32x1xf32> to vector<32x64xf32>
    %6 = arith.addf %3, %5 : vector<32x64xf32>
    %c0_6 = arith.constant 0 : index
    %c0_7 = arith.constant 0 : index
    %7 = vector.load %arg5[%c0_6, %c0_7] : memref<32x64xf32, #tpu.memory_space<vmem>>, vector<32x64xf32>
    %8 = arith.addf %6, %7 : vector<32x64xf32>
    %c0_8 = arith.constant 0 : index
    %c0_9 = arith.constant 0 : index
    %9 = vector.load %arg6[%c0_8, %c0_9] : memref<8x32xf32, #tpu.memory_space<vmem>>, vector<8x32xf32>
    %cst_10 = arith.constant dense<0.000000e+00> : vector<8x64xf32>
    %10 = tpu.matmul %9, %8, %cst_10 {dimension_numbers = #tpu.dot_dimension_numbers<[1], [0], [0], [1], [0, 0, 1, 1], [], []>} : vector<8x32xf32>, vector<32x64xf32>, vector<8x64xf32> -> vector<8x64xf32>
    %cst_11 = arith.constant dense<0xFF800000> : vector<8xf32>
    %11 = vector.multi_reduction <maximumf>, %10, %cst_11 [1] : vector<8x64xf32> to vector<8xf32>
    %12 = vector.shape_cast %11 : vector<8xf32> to vector<8x1xf32>
    %13 = vector.broadcast %12 : vector<8x1xf32> to vector<8x64xf32>
    %14 = arith.subf %10, %13 : vector<8x64xf32>
    %15 = math.exp %14 : vector<8x64xf32>
    %cst_12 = arith.constant dense<0.000000e+00> : vector<8xf32>
    %16 = vector.multi_reduction <add>, %15, %cst_12 [1] : vector<8x64xf32> to vector<8xf32>
    %17 = vector.shape_cast %16 : vector<8xf32> to vector<8x1xf32>
    %18 = tpu.reciprocal %17 {approx = true} : vector<8x1xf32> -> vector<8x1xf32>
    %19 = vector.broadcast %18 : vector<8x1xf32> to vector<8x64xf32>
    %20 = arith.mulf %15, %19 : vector<8x64xf32>
    %cst_13 = arith.constant dense<0.000000e+00> : vector<8x32xf32>
    %21 = tpu.matmul %20, %8, %cst_13 {dimension_numbers = #tpu.dot_dimension_numbers<[1], [1], [0], [0], [0, 0, 1, 0], [], []>} : vector<8x64xf32>, vector<32x64xf32>, vector<8x32xf32> -> vector<8x32xf32>
    %c0_14 = arith.constant 0 : index
    %c0_15 = arith.constant 0 : index
    %22 = vector.load %arg7[%c0_14, %c0_15] : memref<32x128xf32, #tpu.memory_space<vmem>>, vector<32x128xf32>
    %cst_16 = arith.constant dense<0.000000e+00> : vector<8x128xf32>
    %23 = tpu.matmul %21, %22, %cst_16 {dimension_numbers = #tpu.dot_dimension_numbers<[1], [0], [0], [1], [0, 0, 1, 1], [], []>} : vector<8x32xf32>, vector<32x128xf32>, vector<8x128xf32> -> vector<8x128xf32>
    %c0_17 = arith.constant 0 : index
    %c0_18 = arith.constant 0 : index
    %24 = vector.load %arg8[%c0_17, %c0_18] : memref<1x128xf32, #tpu.memory_space<vmem>>, vector<1x128xf32>
    %25 = vector.broadcast %24 : vector<1x128xf32> to vector<8x128xf32>
    %26 = arith.addf %23, %25 : vector<8x128xf32>
    %c0_19 = arith.constant 0 : index
    %c0_20 = arith.constant 0 : index
    %c0_21 = arith.constant 0 : index
    %27 = vector.load %arg9[%c0_19, %c0_20, %c0_21] : memref<1x8x128xf32, #tpu.memory_space<vmem>>, vector<1x8x128xf32>
    %28 = vector.shape_cast %27 : vector<1x8x128xf32> to vector<8x128xf32>
    %29 = vector.shape_cast %26 : vector<8x128xf32> to vector<1x8x128xf32>
    tpu.vector_store %arg9[%c0_19, %c0_20, %c0_21], %29 {strides = array<i32>} : memref<1x8x128xf32, #tpu.memory_space<vmem>>, vector<1x8x128xf32>,
    %c0_22 = arith.constant 0 : index
    %c0_23 = arith.constant 0 : index
    %c0_24 = arith.constant 0 : index
    %30 = vector.load %arg10[%c0_22, %c0_23, %c0_24] : memref<1x8x64xf32, #tpu.memory_space<vmem>>, vector<1x8x64xf32>
    %31 = vector.shape_cast %30 : vector<1x8x64xf32> to vector<8x64xf32>
    %32 = vector.shape_cast %20 : vector<8x64xf32> to vector<1x8x64xf32>
    tpu.vector_store %arg10[%c0_22, %c0_23, %c0_24], %32 {strides = array<i32>} : memref<1x8x64xf32, #tpu.memory_space<vmem>>, vector<1x8x64xf32>,
    return
  }
  func.func @transform_0(%arg0: i32, %arg1: memref<2xi32, #tpu.memory_space<smem>>) -> (i32, i32, i32) {
    %0 = arith.index_cast %arg0 : i32 to index
    %1 = memref.load %arg1[%0] : memref<2xi32, #tpu.memory_space<smem>>
    %c0_i32 = arith.constant 0 : i32
    %c0_i32_0 = arith.constant 0 : i32
    %c0_i32_1 = arith.constant 0 : i32
    return %1, %c0_i32, %c0_i32_0 : i32, i32, i32
  }
  func.func @transform_1(%arg0: i32, %arg1: memref<2xi32, #tpu.memory_space<smem>>) -> (i32, i32) {
    %c0_i32 = arith.constant 0 : i32
    %c0_i32_0 = arith.constant 0 : i32
    %c0_i32_1 = arith.constant 0 : i32
    return %c0_i32, %c0_i32_0 : i32, i32
  }
  func.func @transform_2(%arg0: i32, %arg1: memref<2xi32, #tpu.memory_space<smem>>) -> (i32, i32) {
    %c0_i32 = arith.constant 0 : i32
    %c0_i32_0 = arith.constant 0 : i32
    %c0_i32_1 = arith.constant 0 : i32
    return %c0_i32, %c0_i32_0 : i32, i32
  }
  func.func @transform_3(%arg0: i32, %arg1: memref<2xi32, #tpu.memory_space<smem>>) -> (i32, i32) {
    %c0_i32 = arith.constant 0 : i32
    %c0_i32_0 = arith.constant 0 : i32
    %c0_i32_1 = arith.constant 0 : i32
    return %c0_i32, %c0_i32_0 : i32, i32
  }
  func.func @transform_4(%arg0: i32, %arg1: memref<2xi32, #tpu.memory_space<smem>>) -> (i32, i32) {
    %c0_i32 = arith.constant 0 : i32
    %c0_i32_0 = arith.constant 0 : i32
    %c0_i32_1 = arith.constant 0 : i32
    return %c0_i32, %c0_i32_0 : i32, i32
  }
  func.func @transform_5(%arg0: i32, %arg1: memref<2xi32, #tpu.memory_space<smem>>) -> (i32, i32) {
    %c0_i32 = arith.constant 0 : i32
    %c0_i32_0 = arith.constant 0 : i32
    %c0_i32_1 = arith.constant 0 : i32
    return %c0_i32, %c0_i32_0 : i32, i32
  }
  func.func @transform_6(%arg0: i32, %arg1: memref<2xi32, #tpu.memory_space<smem>>) -> (i32, i32) {
    %c0_i32 = arith.constant 0 : i32
    %c0_i32_0 = arith.constant 0 : i32
    %c0_i32_1 = arith.constant 0 : i32
    return %c0_i32, %c0_i32_0 : i32, i32
  }
  func.func @transform_7(%arg0: i32, %arg1: memref<2xi32, #tpu.memory_space<smem>>) -> (i32, i32, i32) {
    %c0_i32 = arith.constant 0 : i32
    %c0_i32_0 = arith.constant 0 : i32
    %c0_i32_1 = arith.constant 0 : i32
    return %arg0, %c0_i32, %c0_i32_0 : i32, i32, i32
  }
  func.func @transform_8(%arg0: i32, %arg1: memref<2xi32, #tpu.memory_space<smem>>) -> (i32, i32, i32) {
    %c0_i32 = arith.constant 0 : i32
    %c0_i32_0 = arith.constant 0 : i32
    %c0_i32_1 = arith.constant 0 : i32
    return %arg0, %c0_i32, %c0_i32_0 : i32, i32, i32
  }
}

</mosaic_0001>

<bundles_post_ra>
// kernel: tpu_custom_call.1
= control target key start
LH: loop header
LB: loop body
LE: loop exit
PB: predicated region body
PF: predicated region fallthrough
CT: control target
= control target key end

     0   :  { %s1208_s30 = smov [#allocation3]   ;;  %s1556_s0 = inlined_call_operand.hbm [shape: s32[2], index: 0, kind: input, shape index: {}]   ;;  %s1557_s1 = inlined_call_operand.hbm [shape: f32[2,4,64], index: 1, kind: input, shape index: {}]   ;;  %s1558_s2 = inlined_call_operand.vmem [shape: f32[32,4], index: 2, kind: input, shape index: {}]   ;;  %s1559_s3 = inlined_call_operand.vmem [shape: f32[32,1], index: 3, kind: input, shape index: {}]   ;;  %s1560_s4 = inlined_call_operand.vmem [shape: f32[32,64], index: 4, kind: input, shape index: {}]   ;;  %s1561_s5 = inlined_call_operand.vmem [shape: f32[8,32], index: 5, kind: input, shape index: {}]   ;;  %s1562_s6 = inlined_call_operand.vmem [shape: f32[32,128], index: 6, kind: input, shape index: {}]   ;;  %s1563_s7 = inlined_call_operand.vmem [shape: f32[1,128], index: 7, kind: input, shape index: {}]   ;;  %s1564_s8 = inlined_call_operand.hbm [shape: f32[2,8,128], index: 8, kind: output, shape index: {0}]   ;;  %s1565_s9 = inlined_call_operand.hbm [shape: f32[2,8,64], index: 9, kind: output, shape index: {1}]  }
   0x1   :  { %16 = dma.hbm_to_smem %s1556_s0, 16, %s1208_s30, [#allocation2] }
   0x2   :  { %1166 = dma.done.wait [#allocation2], 16 }
   0x3   :  { %1167 = vsyncadd [#allocation2], 4294967280 }
   0x4   :  { %18 = sfence }
   0x5   :  { %19 = vsyncpa [#allocation5], 0 }
   0x6   :  { %21 = vsyncpa [#allocation5 + $0x1], 0 }
   0x7   :  { %22 = vsyncpa [#allocation6], 0 }
   0x8   :  { %24 = vsyncpa [#allocation6 + $0x1], 0 }
   0x9   :  { %25 = vsyncpa [#allocation9], 0 }
   0xa   :  { %27 = vsyncpa [#allocation9 + $0x1], 0  ;;  %s1268_s12 = smov 0   ;;  %s1270_s13 = smov 0  }
   0xb   :  { %s1272_s14 = smov 0   ;;  %s1274_s15 = smov 0  }
   0xc   :  { %s1276_s16 = smov 0   ;;  %s1278_s0 = smov 0  }
   0xd   :  { %s1280_s17 = smov 0  }
   0xe LB: > { %1574 = sst [smem:[#allocation16_spill]] %s1190_s14  ;;  %s1302_s18 = sadd.s32 4294967295, %s1206_s17   ;;  %s1206_s17 = sphi %s1280_s17, %s1594_s17   ;;  %s1202_s0 = sphi %s1278_s0, %s1598_s0   ;;  %s1198_s16 = sphi %s1276_s16, %s1602_s16   ;;  %s1194_s15 = sphi %s1274_s15, %s1601_s15   ;;  %s1190_s14 = sphi %s1272_s14, %s1596_s14   ;;  %s1186_s13 = sphi %s1270_s13, %s1600_s13   ;;  %s1182_s12 = sphi %s1268_s12, %s1599_s12  }
   0xf   : > { %1575 = sst [smem:[#allocation17_spill]] %s1202_s0  ;;  %s872_s19 = sadd.s32 4294967294, %s1206_s17  }
  0x10   : > { %1576 = sst [smem:[#allocation18_spill]] %s1206_s17  ;;  %s1306_s20 = sadd.s32 1, %s1206_s17  }
  0x11   : > { %1577 = sst [smem:[#allocation19_spill]] %s1306_s20  ;;  %s42_s23 = sadd.s32 1, %s1202_s0 }
  0x12   : > { %s37_s21 = sld [smem:[#allocation3 + %s1206_s17]]  ;;  %p49_p0 = scmp.ne.s32.totalorder %s1202_s0, %s1198_s16 }
  0x13   : > { %s38_s22 = sld [smem:[#allocation3 + %s1306_s20]]  ;;  %p50_p1 = scmp.eq.s32.totalorder %s1206_s17, 0 }
  0x14   : > { %p55_p2 = scmp.ne.s32.totalorder %s1198_s16, %s1194_s15  ;;  %p56_p3 = scmp.eq.s32.totalorder %s1302_s18, 0 }
  0x15   : > { %p1316_p4 = por %p50_p1, %p49_p0  ;;  %s191_s25 = ssub.s32 %s1206_s17, %s1306_s20 }
  0x16   : > { %p1322_p5 = por %p56_p3, %p55_p2  ;;  %p192_p6 = scmp.eq.s32.totalorder %s191_s25, 0 }
  0x17   : > { %s194_s27 = sadd.s32 1, %s1190_s14  ;;  %p204_p7 = scmp.ne.s32.totalorder %s1190_s14, %s1186_s13 }
  0x18   : > { %s1579_s26 = scalar_select %p1322_p5, 1, 0 }
  0x19   : > { %s39_s28 = ssub.s32 %s37_s21, %s38_s22  ;;  %p205_p8 = scmp.eq.s32.totalorder %s1302_s18, 1 }
  0x1a   : > { %p40_p9 = scmp.eq.s32.totalorder %s39_s28, 0  ;;  %p210_p10 = scmp.ne.s32.totalorder %s1186_s13, %s1182_s12 }
  0x1b   : > { %s1333_s29 = scalar_select %p192_p6, %s1190_s14, %s194_s27  }
  0x1c   : > { %s1336_s30 = scalar_select %p40_p9, %s1202_s0, %s42_s23  }
  0x1d   : > { %1580 = sst [smem:[#allocation20_spill]] %s1333_s29  ;;  %p1338_p11 = por %p205_p8, %p204_p7 }
  0x1e   : > { %1581 = sst [smem:[#allocation21_spill]] %s1336_s30  ;;  %p211_p12 = scmp.eq.s32.totalorder %s872_s19, 1 }
  0x1f   : > { %s1582_s10 = scalar_select %p1338_p11, 1, 0 }
  0x20   : > { %p982_p0 = scmp.lt.s32.totalorder %s1206_s17, 2  ;;  %p1344_p1 = por %p211_p12, %p210_p10 }
  0x21   : > { %s275_s15 = sand.u32 1, %s1202_s0   ;;  %p877_p3 = scmp.ge.s32.totalorder %s1206_s17, 1 }
  0x22   : > { %s1583_s11 = scalar_select %p1344_p1, 1, 0 }
  0x23   : > { %s875_s21 = sshll.u32 %s275_s15, 2  ;;  %p1351_p2 = pnand %p982_p0, %p1316_p4 }
  0x24   : > { %1584 = sst [smem:[#allocation22_spill]] %s1583_s11  ;;  %p292_p6 = scmp.lt.s32.totalorder %s1206_s17, 3 }
  0x25   : > { %s961_s23 = scalar_select %p1316_p4, [#allocation3], [#allocation10] }
  0x26   : > { %s962_s25 = scalar_select %p1316_p4, %s1206_s17, 0 }
  0x27   : > { %s1604_s23 = smov (!%p982_p0, %s961_s23), [#allocation11]  ;;  %s279_s27 = scalar_lea.vmem [#allocation4], %s875_s21 }
  0x28   : > { %s1606_s25 = smov (!%p982_p0, %s962_s25), 0  ;;  %s287_s28 = sshll.u32 %s279_s27, 4  ;;  %s1366_s28 = int_to_ptr.vmem [resolvable:$true] %s287_s28 }
  0x29   : > { %s280_s19 = sld [smem:[%s1604_s23 + %s1606_s25]]  ;;  %p1362_p7 = pnand %p877_p3, %p292_p6 }
  0x2a   : > { %s276_s20 = scalar_lea.sflag [#allocation5], %s275_s15  ;;  %p1060_p8 = pneg %p1351_p2 }
  0x2b   : > { %s1586_s30 = scalar_select %p1362_p7, 1, 0 }
  0x2c   : > { %s1063_s25 = scalar_lea.hbm %s1557_s1, 128 }
  0x2f   : > { %s876_s0 = sshll.u32 %s280_s19, 6 }
  0x30   : > { %s285_s24 = scalar_lea.hbm %s1557_s1, %s876_s0 }
  0x31   : > { %s1058_s11 = scalar_lea.hbm %s285_s24, 64  ;;  %p1064_p12 = scmp.lt.s32.totalorder %s285_s24, %s1557_s1 }
  0x32   : > { %p1059_p4 = scmp.ne.s32.totalorder %s285_s24, %s1058_s11  ;;  %p1065_p0 = scmp.lt.s32.totalorder %s1063_s25, %s1058_s11 }
  0x34   : > { %p1061_p9 = pnand %p1060_p8, %p1059_p4  ;;  %p1066_p3 = por %p1065_p0, %p1064_p12 }
  0x36   : > { %p1062_p10 = pneg %p1061_p9 }
  0x38   : > { %p1067_p6 = pnand %p1066_p3, %p1062_p10 }
  0x3a   : > { %1070 = shalt.err (!%p1067_p6)
}
  0x3b   : > { %s1071_s14 = scalar_lea.vmem %s1366_s28, 64  ;;  %s1209_s0 = smov [#allocation4]  }
  0x3c   : > { %p1072_p13 = scmp.ne.s32.totalorder %s1366_s28, %s1071_s14  ;;  %s1076_s29 = sshll.u32 %s1209_s0, 4  ;;  %s1077_s29 = int_to_ptr.vmem [resolvable:$false] %s1076_s29 }
  0x3d   : > { %s1078_s15 = scalar_lea.vmem %s1077_s29, 128  ;;  %p1079_p9 = scmp.lt.s32.totalorder %s1366_s28, %s1077_s29 }
  0x3e   : > { %p1074_p1 = pnand %p1072_p13, %p1060_p8  ;;  %p1080_p11 = scmp.lt.s32.totalorder %s1078_s15, %s1071_s14 }
  0x40   : > { %p1075_p4 = pneg %p1074_p1  ;;  %p1081_p5 = por %p1080_p11, %p1079_p9 }
  0x42   : > { %p1082_p7 = pnand %p1081_p5, %p1075_p4 }
  0x44   : > { %1085 = shalt.err (!%p1082_p7)
}
  0x45   : > { %974 = dma.hbm_to_vmem [thread:$0]  (!%p1351_p2), %s285_s24, 64, %s1366_s28, %s276_s20  }
  0x46   : > { %p1587_p10 = scmp.ne.s32.totalorder %s1586_s30, 0 }
  0x47   : > { %s298_s17 = sand.u32 (!%p1587_p10), 1, %s1198_s16   ;;  %p1588_p13 = scmp.ne.s32.totalorder (!%p1587_p10), %s1579_s26, 0 }
  0x48   : > { %296 = sbr.rel (%p1587_p10) target bundleno = 1196 (0x4ac), region = 48  ;;  %s878_s11 = sshll.u32 (!%p1587_p10), %s298_s17, 2 }
  0x49   : > { %s299_s19 = scalar_lea.sflag (!%p1587_p10), [#allocation5], %s298_s17  ;;  %s302_s21 = scalar_lea.vmem (!%p1587_p10), [#allocation4], %s878_s11 }
  0x4d   : > { %1169 = dma.done.wait (%p1588_p13), %s299_s19, 64  }
  0x4e   : > { %1171 = vsyncadd (%p1588_p13), %s299_s19, 4294967232  ;;  %v1210_v0 = vmov 0   ;;  %vm383_vm0 = vcmask 1043456   ;;  %vm370_vm1 = vcmask 31744   ;;  %v341_v1 = vld [vmem:[%s302_s21] sm:$0xf] }
  0x4f   : > { %1045 = vset.pattern.permute.xlu1 %v1210_v0  ;;  %1044 = vset.pattern.permute.xlu0 %v1210_v0  ;;  %v342_v2 = vld [vmem:[%s1558_s2] sm:$0xff]  ;;  %v343_v3 = vld [vmem:[%s1558_s2 + $0x8] sm:$0xff]  ;;  %v344_v4 = vld [vmem:[%s1558_s2 + $0x10] sm:$0xff]  ;;  %v1211_v10 = vmov 0.0   ;;  %vm1212_vm2 = vmmov 0   ;;  %vm555_vm3 = vcmask 523264  }
  0x50   : > { %920 = vmatprep.subr.msk.mxu0 %vm383_vm0, %v341_v1  ;;  %922 = vmatprep.mubr.msk.f32.mxu0 %vm370_vm1, %v342_v2  ;;  %v349_v5 = vld [vmem:[%s1559_s3 + $0x18] sm:$0xff]  ;;  %v347_v6 = vld [vmem:[%s1559_s3 + $0x8] sm:$0xff]  ;;  %v348_v7 = vld [vmem:[%s1559_s3 + $0x10] sm:$0xff]  ;;  %vm481_vm4 = vcmask 261120   ;;  %s1470_s19 = sand.u32 1, %s1186_s13   ;;  %s896_s28 = sshll.u32 %s1302_s18, 7 }
  0x51   : > { %921 = vmatpush3.msk.msra.mxu0 %vm383_vm0, %v341_v1  ;;  %367 = vperm.xlu0 %1044, %v349_v5   ;;  %v345_v8 = vld [vmem:[%s1558_s2 + $0x18] sm:$0xff]  ;;  %v346_v9 = vld [vmem:[%s1559_s3] sm:$0xff]  ;;  %v474_v21 = vld [vmem:[%s1560_s4 + $0x10] sm:$0xff]  ;;  %s879_s21 = sshll.u32 %s1470_s19, 3  ;;  %s768_s23 = scalar_lea.hbm %s1565_s9, %s896_s28 }
  0x52   : > { %923 = vmatmul.mubr.msk.f32.vlgmr.msra.gmra.mxu0 %vm370_vm1, %v343_v3  ;;  %357 = vperm.xlu1 %1045, %v347_v6   ;;  %v475_v16 = vld [vmem:[%s1560_s4 + $0x18] sm:$0xff]  ;;  %v473_v25 = vld [vmem:[%s1560_s4 + $0x8] sm:$0xff]  ;;  %v472_v28 = vld [vmem:[%s1560_s4] sm:$0xff]  ;;  %s339_s20 = scalar_lea.vmem [#allocation8], %s879_s21  ;;  %s744_s27 = scalar_lea.sflag [#allocation9], %s1470_s19 }
  0x53   : > { %925 = vmatprep.mubr.msk.f32.mxu0 %vm370_vm1, %v344_v4  ;;  %928 = vmatprep.subr.mxu1 %v1211_v10  ;;  %v480_v31 = vld [vmem:[%s1561_s5] sm:$0xff]  ;;  %v655_v40 = vld [vmem:[%s1562_s6 + $0x18] sm:$0xff]  ;;  %v654_v41 = vld [vmem:[%s1562_s6 + $0x10] sm:$0xff]  ;;  %s770_s25 = sshll.u32 %s339_s20, 4  ;;  %p1589_p11 = scmp.ne.s32.totalorder %s1582_s10, 0  ;;  %s771_s25 = int_to_ptr.vmem [resolvable:$true] %s770_s25 }
  0x54   : > { %939 = vmatprep.subr.mxu0 %v1211_v10  ;;  %936 = vmatprep.mubr.msk.f32.mxu1 %vm1212_vm2, %v1211_v10  ;;  %v653_v42 = vld [vmem:[%s1562_s6 + $0x8] sm:$0xff]  ;;  %v652_v46 = vld [vmem:[%s1562_s6] sm:$0xff]  ;;  %s1086_s14 = scalar_lea.vmem %s771_s25, 128  ;;  %s1213_s0 = smov [#allocation8]  }
  0x55   : > { %362 = vperm.xlu0 %1044, %v348_v7   ;;  %p1087_p5 = scmp.ne.s32.totalorder %s771_s25, %s1086_s14  ;;  %s1090_s29 = sshll.u32 %s1213_s0, 4  ;;  %s1091_s29 = int_to_ptr.vmem [resolvable:$false] %s1090_s29 }
  0x56   : > { %926 = vmatmul.mubr.msk.f32.gmra.mxu0 %vm370_vm1, %v345_v8  ;;  %352 = vperm.xlu1 %1045, %v346_v9   ;;  %s1092_s15 = scalar_lea.vmem %s1091_s29, 256  ;;  %p1093_p7 = scmp.lt.s32.totalorder %s771_s25, %s1091_s29 }
  0x57   : > { %947 = vmatprep.mubr.msk.f32.mxu0 %vm1212_vm2, %v1211_v10  ;;  %p1088_p1 = pnand %p1087_p5, %p1589_p11  ;;  %p1094_p8 = scmp.lt.s32.totalorder %s1092_s15, %s1086_s14 }
  0x59   : > { %p1089_p2 = pneg %p1088_p1  ;;  %p1095_p12 = por %p1094_p8, %p1093_p7 }
  0x5b   : > { %p1096_p0 = pnand %p1095_p12, %p1089_p2 }
  0xcc   : > { %v368_v11 = vpop.permute.xlu0 %367 }
  0xcd   : > { %v358_v12 = vpop.permute.xlu1 %357 }
  0xd0   : > { %v363_v17 = vpop.permute.xlu0 %362 }
  0xd1   : > { %v353_v19 = vpop.permute.xlu1 %352 }
 0x112   : > { %v924_v13 = vpop.f32.mrf.mxu0 }
 0x113   : > { %v459_v22 = vadd.f32 %v924_v13, %v358_v12 }
 0x114   : > { %v453_v14 = vpop.f32.mrf.mxu0 }
 0x115   : > { %v454_v26 = vadd.f32 %v453_v14, %v353_v19  ;;  %v477_v29 = vadd.f32 %v473_v25, %v459_v22 }
 0x116   : > { %v927_v15 = vpop.f32.mrf.mxu0 }
 0x117   : > { %v469_v18 = vadd.f32 %v927_v15, %v368_v11  ;;  %v476_v30 = vadd.f32 %v472_v28, %v454_v26 }
 0x118   : > { %v463_v20 = vpop.f32.mrf.mxu0 }
 0x119   : > { %v464_v23 = vadd.f32 %v463_v20, %v363_v17  ;;  %v479_v24 = vadd.f32 %v475_v16, %v469_v18 }
 0x11b   : > { %v478_v27 = vadd.f32 %v474_v21, %v464_v23  ;;  %929 = vmatpush3.msra.mxu1 %v479_v24  ;;  %940 = vmatpush3.xpose.msk.msra.mxu0 %vm555_vm3, %v479_v24 }
 0x11c   : > { %930 = vmatprep.subr.mxu1 %v1211_v10  ;;  %941 = vmatprep.subr.mxu0 %v1211_v10 }
 0x11d   : > { %931 = vmatpush3.msra.mxu1 %v478_v27 }
 0x11e   : > { %932 = vmatprep.subr.mxu1 %v1211_v10 }
 0x11f   : > { %933 = vmatpush3.msra.mxu1 %v477_v29  ;;  %942 = vmatpush3.xpose.msk.msra.mxu0 %vm555_vm3, %v478_v27 }
 0x120   : > { %934 = vmatprep.subr.mxu1 %v1211_v10  ;;  %943 = vmatprep.subr.mxu0 %v1211_v10 }
 0x121   : > { %935 = vmatpush3.msra.mxu1 %v476_v30 }
 0x122   : > { %937 = vmatmul.mubr.msk.f32.vlgmr.msra.gmra.mxu1 %vm481_vm4, %v480_v31  ;;  %950 = vmatprep.subr.mxu1 %v1211_v10 }
 0x123   : > { %944 = vmatpush3.xpose.msk.msra.mxu0 %vm555_vm3, %v477_v29  ;;  %958 = vmatprep.mubr.msk.f32.mxu1 %vm1212_vm2, %v1211_v10 }
 0x124   : > { %945 = vmatprep.subr.mxu0 %v1211_v10  ;;  %951 = vmatpush3.msra.mxu1 %v655_v40 }
 0x125   : > { %952 = vmatprep.subr.mxu1 %v1211_v10 }
 0x126   : > { %953 = vmatpush3.msra.mxu1 %v654_v41 }
 0x127   : > { %946 = vmatpush3.xpose.msk.msra.mxu0 %vm555_vm3, %v476_v30  ;;  %954 = vmatprep.subr.mxu1 %v1211_v10 }
 0x128   : > { %955 = vmatpush3.msra.mxu1 %v653_v42 }
 0x129   : > { %956 = vmatprep.subr.mxu1 %v1211_v10 }
 0x12a   : > { %957 = vmatpush3.msra.mxu1 %v652_v46 }
 0x1e2   : > { %v551_v32 = vpop.f32.mrf.mxu1 }
 0x1e3   : > { %v556_v33 = vsel %vm555_vm3, %v551_v32, -inf }
 0x1e4   : > { %557 = vmax.xlane.f32.xlu0 %v556_v33  ;;  %v938_v34 = vpop.f32.mrf.mxu1 }
 0x26d   : > { %v558_v35 = vpop.xlane.xlu0 %557 }
 0x26e   : > { %v559_v36 = vsub.f32 %v551_v32, %v558_v35 }
 0x270   : > { %v560_v37 = vmul.f32 1.442695, %v559_v36 }
 0x272   : > { %1046 = vpow2.f32 %v560_v37 }
 0x27f   : > { %v1047_v38 = vpop.eup %1046 }
 0x280   : > { %v562_v39 = vsel %vm555_vm3, %v1047_v38, 0.0 }
 0x281   : > { %563 = vadd.xlane.f32.xlu1 %v562_v39 }
 0x30a   : > { %v564_v43 = vpop.xlane.xlu1 %563 }
 0x30b   : > { %1048 = vrcp.f32 %v564_v43 }
 0x318   : > { %v1049_v44 = vpop.eup %1048 }
 0x319   : > { %v566_v45 = vmul.f32 %v1049_v44, %v1047_v38 }
 0x31b   : > { %948 = vmatmul.mubr.msk.f32.vlgmr.msra.gmra.mxu0 %vm555_vm3, %v566_v45  ;;  %737 = vst.msk [vmem:[%s339_s20] sm:$0xff] %vm555_vm3, %v566_v45 }
 0x3db   : > { %v648_v47 = vpop.f32.mrf.mxu0 }
 0x3dc   : > { %959 = vmatmul.mubr.msk.f32.vlgmr.msra.gmra.mxu1 %vm481_vm4, %v648_v47 }
 0x3dd   : > { %v949_v48 = vpop.f32.mrf.mxu0 }
 0x3de   : > { %1099 = shalt.err (!%p1096_p0)
}
 0x3df   : > { %s1100_s17 = scalar_lea.hbm %s768_s23, 128  ;;  %s1104_s30 = scalar_lea.hbm %s1565_s9, 256 }
 0x3e0   : > { %p1101_p3 = scmp.ne.s32.totalorder %s768_s23, %s1100_s17  ;;  %p1105_p9 = scmp.lt.s32.totalorder %s768_s23, %s1565_s9 }
 0x3e1   : > { %p1106_p10 = scmp.lt.s32.totalorder %s1104_s30, %s1100_s17 }
 0x3e2   : > { %p1102_p6 = pnand %p1101_p3, %p1589_p11 }
 0x3e3   : > { %p1107_p13 = por %p1106_p10, %p1105_p9 }
 0x3e4   : > { %p1103_p4 = pneg %p1102_p6 }
 0x3e6   : > { %p1108_p5 = pnand %p1107_p13, %p1103_p4 }
 0x3e8   : > { %1111 = shalt.err (!%p1108_p5)
}
 0x3e9   : > { %966 = dma.vmem_to_hbm [thread:$0]  (%p1589_p11), %s771_s25, 128, %s768_s23, %s744_s27   ;;  %v892_v49 = vld [vmem:[%s1563_s7] ss:$0 sm:$0xff] }
 0x3ea   : > { %s332_s0 = scalar_lea.vmem [#allocation7], %s879_s21  ;;  %s1510_s11 = scalar_lea.hbm %s1564_s8, %s896_s28 }
 0x3eb   : > { %s757_s29 = sshll.u32 %s332_s0, 4  ;;  %s739_s20 = scalar_lea.sflag [#allocation6], %s1470_s19  ;;  %s758_s29 = int_to_ptr.vmem [resolvable:$true] %s757_s29 }
 0x3ec   : > { %s1112_s23 = scalar_lea.vmem %s758_s29, 128  ;;  %s1214_s25 = smov [#allocation7]  }
 0x3ed   : > { %p1113_p1 = scmp.ne.s32.totalorder %s758_s29, %s1112_s23  ;;  %s1116_s21 = sshll.u32 %s1214_s25, 4  ;;  %s1117_s21 = int_to_ptr.vmem [resolvable:$false] %s1116_s21 }
 0x3ee   : > { %s1118_s27 = scalar_lea.vmem %s1117_s21, 256  ;;  %p1119_p8 = scmp.lt.s32.totalorder %s758_s29, %s1117_s21 }
 0x3ef   : > { %p1114_p2 = pnand %p1113_p1, %p1589_p11  ;;  %p1120_p12 = scmp.lt.s32.totalorder %s1118_s27, %s1112_s23 }
 0x3f1   : > { %p1115_p7 = pneg %p1114_p2  ;;  %p1121_p0 = por %p1120_p12, %p1119_p8 }
 0x3f3   : > { %p1122_p3 = pnand %p1121_p0, %p1115_p7 }
 0x49c   : > { %v732_v50 = vpop.f32.mrf.mxu1 }
 0x49d   : > { %v733_v51 = vadd.f32 %v892_v49, %v732_v50 }
 0x49e   : > { %v960_v52 = vpop.f32.mrf.mxu1 }
 0x49f   : > { %736 = vst [vmem:[%s332_s0] sm:$0xff] %v733_v51 }
 0x4a0   : > { %1125 = shalt.err (!%p1122_p3)
}
 0x4a1   : > { %s1126_s18 = scalar_lea.hbm %s1510_s11, 128  ;;  %s1130_s30 = scalar_lea.hbm %s1564_s8, 256 }
 0x4a2   : > { %p1127_p6 = scmp.ne.s32.totalorder %s1510_s11, %s1126_s18  ;;  %p1131_p10 = scmp.lt.s32.totalorder %s1510_s11, %s1564_s8 }
 0x4a3   : > { %p1132_p13 = scmp.lt.s32.totalorder %s1130_s30, %s1126_s18 }
 0x4a4   : > { %p1128_p4 = pnand %p1127_p6, %p1589_p11 }
 0x4a5   : > { %p1133_p5 = por %p1132_p13, %p1131_p10 }
 0x4a6   : > { %p1129_p9 = pneg %p1128_p4 }
 0x4a8   : > { %p1134_p1 = pnand %p1133_p5, %p1129_p9 }
 0x4aa   : > { %1137 = shalt.err (!%p1134_p1)
}
 0x4ab   : > { %965 = dma.vmem_to_hbm [thread:$0]  (%p1589_p11), %s758_s29, 128, %s1510_s11, %s739_s20  }
 0x4ac PF: > { %s1590_s26 = sld [smem:[#allocation22_spill]]  ;;  %s782_s0 = sand.u32 1, %s1182_s12  }
 0x4ad   : > { %s1591_s14 = sld [smem:[#allocation18_spill]]  ;;  %s783_s15 = scalar_lea.sflag [#allocation6], %s782_s0 }
 0x4b2   : > { %p1592_p2 = scmp.ne.s32.totalorder %s1590_s26, 0 }
 0x4b3   : > { %p1593_p7 = scmp.ge.s32.totalorder %s1591_s14, 2 }
 0x4b5   : > { %p976_p8 = pnand %p1593_p7, %p1592_p2 }
 0x4b7   : > { %p977_p12 = pneg %p976_p8 }
 0x4b9   : > { %1173 = dma.done.wait (%p977_p12), %s783_s15, 128  }
 0x4ba   : > { %1175 = vsyncadd (%p977_p12), %s783_s15, 4294967168  ;;  %s792_s17 = scalar_lea.sflag [#allocation9], %s782_s0 }
 0x4bb   : > { %1177 = dma.done.wait (%p977_p12), %s792_s17, 128  }
 0x4bc   : > { %1179 = vsyncadd (%p977_p12), %s792_s17, 4294967168  ;;  %s1594_s17 = sld [smem:[#allocation19_spill]]  ;;  %s1599_s12 = smov %s1186_s13 }
 0x4bd   : > { %s1595_s10 = sld [smem:[#allocation16_spill]]  ;;  %s1601_s15 = smov %s1198_s16 }
 0x4be   : > { %s1596_s14 = sld [smem:[#allocation20_spill]] }
 0x4bf   : > { %s1597_s29 = sld [smem:[#allocation17_spill]] }
 0x4c0   : > { %s1598_s0 = sld [smem:[#allocation21_spill]] }
 0x4c2   : > { %p30_p11 = scmp.ge.s32.totalorder %s1594_s17, 4  }
 0x4c3   : > { %s1600_s13 = smov %s1595_s10 }
 0x4c4   :  { %32 = sbr.rel (!%p30_p11) target bundleno = 14 (0xe), region = 110 }
 0x4c5   : > { %s1602_s16 = smov %s1597_s29 }
 0x4c9   :  { %797 = vsyncpa [#allocation5], 1 }
 0x4ca   :  { %799 = vsyncpa [#allocation5 + $0x1], 1 }
 0x4cb   :  { %800 = vsyncpa [#allocation6], 1 }
 0x4cc   :  { %802 = vsyncpa [#allocation6 + $0x1], 1 }
 0x4cd   :  { %803 = vsyncpa [#allocation9], 1 }
 0x4ce   :  { %805 = vsyncpa [#allocation9 + $0x1], 1 }

</bundles_post_ra>
